<compile_context>
chip_gen: v5e
topology: v5e:2x2
jax: 0.10.0
libtpu: 0.0.40
codegen_flags: <defaults>
</compile_context>

<pallas_src>
import jax
import jax.numpy as jnp
from jax.experimental import pallas as pl
from jax.experimental.pallas import tpu as pltpu

_LANE = 128
_SUBLANE = 8
_MiB = 1024 * 1024


def _classifier_kernel(x_ref, w_ref, b_ref, o_ref):
    # x_ref: (TM, F), w_ref: (F, C_pad), b_ref: (1, C_pad) f32, o_ref: (TM, C_pad)
    # MXU matmul in the native input dtype, f32 accumulation.
    logits = jnp.dot(x_ref[...], w_ref[...], preferred_element_type=jnp.float32)
    logits = logits + b_ref[...]

    # Numerically stable softmax over the class axis, all in f32.
    # Padded classes carry a -1e30 bias -> exp() == 0, denominator unchanged.
    m = jnp.max(logits, axis=-1, keepdims=True)
    e = jnp.exp(logits - m)
    denom = jnp.sum(e, axis=-1, keepdims=True)
    # Exact divide (NOT approx reciprocal): keeps each row summing to 1 to f32
    # precision; compute has huge slack in this mem-bound kernel.
    o_ref[...] = (e / denom).astype(o_ref.dtype)


def _round_up(x, m):
    return ((x + m - 1) // m) * m


def _vmem_capacity_bytes():
    try:
        return int(pltpu.get_tpu_info().vmem_capacity_bytes)
    except Exception:
        return 64 * _MiB  # conservative: v7x per-TensorCore physical VMEM


def _plan_bytes(tm, F, C_pad, in_bytes, out_bytes):
    """Lane/sublane-padded VMEM footprint of the pipelined kernel."""
    F_lane = _round_up(F, _LANE)
    F_sub = _round_up(F, _SUBLANE)
    x_tiles = 2 * tm * F_lane * in_bytes     # double-buffered activation tiles
    o_tiles = 2 * tm * C_pad * out_bytes     # double-buffered output tiles
    w_block = F_sub * C_pad * in_bytes       # resident weights (single-buffered)
    b_block = _SUBLANE * C_pad * 4           # f32 bias row (sublane padded)
    interm = 2 * tm * C_pad * 4              # f32 logits + exp intermediates
    return x_tiles + o_tiles + w_block + b_block + interm


def _pick_batch_tile(B, F, C_pad, in_bytes, out_bytes, budget):
    """Pick a batch tile that fits VMEM and divides the padded batch tightly."""
    b8 = max(_SUBLANE, _round_up(B, _SUBLANE))

    def fits(t):
        return _plan_bytes(t, F, C_pad, in_bytes, out_bytes) <= budget

    # Whole (8-row padded) batch in one tile: zero waste, one grid step.
    if b8 <= 1024 and fits(b8):
        return b8, b8

    best = None
    for t in (1024, 896, 768, 640, 512, 448, 384, 320, 256, 192, 128, 64, 32, 16, 8):
        if t > b8 or not fits(t):
            continue
        padded = pl.cdiv(b8, t) * t
        waste = padded - b8
        if best is None:
            best = (t, padded)
        if waste * 8 <= t:  # largest fitting tile with <= 12.5% padding waste
            return t, padded
    if best is None:  # pathologically large F/C: smallest legal tile
        return _SUBLANE, pl.cdiv(b8, _SUBLANE) * _SUBLANE
    return best


def _run_pallas(feature_p, w_pad, bias2d, tm, C_pad, out_dtype, vmem_limit, cost,
                single_buffer_params):
    b_padded, F = feature_p.shape
    resident_kw = {"pipeline_mode": pl.Buffered(1)} if single_buffer_params else {}
    return pl.pallas_call(
        _classifier_kernel,
        out_shape=jax.ShapeDtypeStruct((b_padded, C_pad), out_dtype),
        grid=(b_padded // tm,),
        in_specs=[
            pl.BlockSpec((tm, F), lambda i: (i, 0)),                 # pipelined x tiles
            pl.BlockSpec((F, C_pad), lambda i: (0, 0), **resident_kw),   # resident W
            pl.BlockSpec((1, C_pad), lambda i: (0, 0), **resident_kw),   # resident bias
        ],
        out_specs=pl.BlockSpec((tm, C_pad), lambda i: (i, 0)),       # lane-dense output
        compiler_params=pltpu.CompilerParams(
            dimension_semantics=("parallel",),
            vmem_limit_bytes=vmem_limit,
        ),
        cost_estimate=cost,
    )(feature_p, w_pad, bias2d)


def classifier_forward(feature, weight, bias, *, force_pallas=False):
    """feature: (B, F), weight: (F, C), bias: (C,) -> softmax(feature @ W + b), (B, C)."""
    B, F = feature.shape
    C = weight.shape[1]
    out_dtype = feature.dtype

    # Tiny problems are launch/prologue dominated: let XLA fuse them instead.
    if not force_pallas and B * F < 64 * 1024:
        logits = (feature.astype(jnp.float32) @ weight.astype(jnp.float32)
                  + bias.astype(jnp.float32))
        return jax.nn.softmax(logits, axis=1).astype(out_dtype)

    # Lane-dense class axis: pad C up to a multiple of 128 with zero weight
    # columns and a large finite negative bias (exp()==0, denom unchanged).
    C_pad = max(_LANE, _round_up(C, _LANE))
    w_pad = weight
    if C_pad != C:
        w_pad = jnp.zeros((F, C_pad), dtype=weight.dtype).at[:, :C].set(weight)
    bias2d = jnp.full((1, C_pad), -1e30, dtype=jnp.float32).at[:, :C].set(
        bias.astype(jnp.float32))

    in_bytes = jnp.dtype(feature.dtype).itemsize
    out_bytes = jnp.dtype(out_dtype).itemsize

    cap = _vmem_capacity_bytes()
    budget = min(48 * _MiB, cap * 3 // 4)        # per-TC plan, headroom on v7x
    vmem_limit = int(min(cap, budget + 16 * _MiB))

    tm, b_padded = _pick_batch_tile(B, F, C_pad, in_bytes, out_bytes, budget)
    feature_p = feature if b_padded == B else jnp.pad(
        feature, ((0, b_padded - B), (0, 0)))

    cost = pl.CostEstimate(
        flops=2 * b_padded * F * C_pad,
        transcendentals=b_padded * C_pad,
        bytes_accessed=(b_padded * F * in_bytes + F * C_pad * in_bytes
                        + b_padded * C_pad * out_bytes),
    )

    try:
        out = _run_pallas(feature_p, w_pad, bias2d, tm, C_pad, out_dtype,
                          vmem_limit, cost, single_buffer_params=True)
    except Exception:
        # Fallback if Buffered(1) single-buffering hints are unsupported here.
        out = _run_pallas(feature_p, w_pad, bias2d, tm, C_pad, out_dtype,
                          vmem_limit, cost, single_buffer_params=False)

    return out[:B, :C]


if __name__ == "__main__":
    # Small shapes consistent with the module: Classifier(feature_dim=32, class_num=16)
    batch, feature_dim, class_num = 8, 32, 16

    key = jax.random.PRNGKey(0)
    k_x, k_w, k_b = jax.random.split(key, 3)

    # Deterministic synthetic parameters (PyTorch Linear-style uniform init bound)
    bound = 1.0 / (feature_dim ** 0.5)
    feature = jax.random.normal(k_x, (batch, feature_dim), dtype=jnp.float32)
    weight = jax.random.uniform(
        k_w, (feature_dim, class_num), minval=-bound, maxval=bound, dtype=jnp.float32
    )
    bias = jax.random.uniform(
        k_b, (class_num,), minval=-bound, maxval=bound, dtype=jnp.float32
    )

    # force_pallas=True so the demo actually exercises the Pallas kernel
    # (at these toy shapes the wrapper would otherwise dispatch to XLA).
    probs = classifier_forward(feature, weight, bias, force_pallas=True)
    probs = jax.block_until_ready(probs)

    # Sanity check against pure-JAX reference.
    ref = jax.nn.softmax(feature @ weight + bias, axis=1)
    assert probs.shape == (batch, class_num)
    assert jnp.allclose(probs, ref, atol=1e-3, rtol=1e-3)
    assert jnp.allclose(jnp.sum(probs, axis=1), 1.0, atol=1e-4)

    print("KERNEL_OK")
</pallas_src>

<mosaic_0001>
module attributes {stable_mosaic.version = 11 : i64} {
  func.func @_classifier_kernel(%arg0: i32, %arg1: memref<8x32xf32, #tpu.memory_space<vmem>>, %arg2: memref<32x128xf32, #tpu.memory_space<vmem>>, %arg3: memref<1x128xf32, #tpu.memory_space<vmem>>, %arg4: memref<8x128xf32, #tpu.memory_space<vmem>>) attributes {dimension_semantics = [#tpu.dimension_semantics<parallel>], iteration_bounds = array<i64: 1>, scalar_prefetch = 0 : i64, scratch_operands = 0 : i64, tpu.core_type = #tpu.core_type<tc>, window_params = [{transform_indices = @transform_0, window_bounds = array<i64: 8, 32>}, {pipeline_mode = #tpu.pipeline_mode<synchronous>, transform_indices = @transform_1, window_bounds = array<i64: 32, 128>}, {pipeline_mode = #tpu.pipeline_mode<synchronous>, transform_indices = @transform_2, window_bounds = array<i64: 1, 128>}, {transform_indices = @transform_3, window_bounds = array<i64: 8, 128>}]} {
    %c0 = arith.constant 0 : index
    %c0_0 = arith.constant 0 : index
    %0 = vector.load %arg1[%c0, %c0_0] : memref<8x32xf32, #tpu.memory_space<vmem>>, vector<8x32xf32>
    %c0_1 = arith.constant 0 : index
    %c0_2 = arith.constant 0 : index
    %1 = vector.load %arg2[%c0_1, %c0_2] : memref<32x128xf32, #tpu.memory_space<vmem>>, vector<32x128xf32>
    %cst = arith.constant dense<0.000000e+00> : vector<8x128xf32>
    %2 = tpu.matmul %0, %1, %cst {dimension_numbers = #tpu.dot_dimension_numbers<[1], [0], [0], [1], [0, 0, 1, 1], [], []>} : vector<8x32xf32>, vector<32x128xf32>, vector<8x128xf32> -> vector<8x128xf32>
    %c0_3 = arith.constant 0 : index
    %c0_4 = arith.constant 0 : index
    %3 = vector.load %arg3[%c0_3, %c0_4] : memref<1x128xf32, #tpu.memory_space<vmem>>, vector<1x128xf32>
    %4 = vector.broadcast %3 : vector<1x128xf32> to vector<8x128xf32>
    %5 = arith.addf %2, %4 : vector<8x128xf32>
    %cst_5 = arith.constant dense<0xFF800000> : vector<8xf32>
    %6 = vector.multi_reduction <maximumf>, %5, %cst_5 [1] : vector<8x128xf32> to vector<8xf32>
    %7 = vector.shape_cast %6 : vector<8xf32> to vector<8x1xf32>
    %8 = vector.broadcast %7 : vector<8x1xf32> to vector<8x128xf32>
    %9 = arith.subf %5, %8 : vector<8x128xf32>
    %10 = math.exp %9 : vector<8x128xf32>
    %cst_6 = arith.constant dense<0.000000e+00> : vector<8xf32>
    %11 = vector.multi_reduction <add>, %10, %cst_6 [1] : vector<8x128xf32> to vector<8xf32>
    %12 = vector.shape_cast %11 : vector<8xf32> to vector<8x1xf32>
    %13 = vector.broadcast %12 : vector<8x1xf32> to vector<8x128xf32>
    %14 = arith.divf %10, %13 : vector<8x128xf32>
    %c0_7 = arith.constant 0 : index
    %c0_8 = arith.constant 0 : index
    %15 = vector.load %arg4[%c0_7, %c0_8] : memref<8x128xf32, #tpu.memory_space<vmem>>, vector<8x128xf32>
    tpu.vector_store %arg4[%c0_7, %c0_8], %14 {strides = array<i32>} : memref<8x128xf32, #tpu.memory_space<vmem>>, vector<8x128xf32>,
    return
  }
  func.func @transform_0(%arg0: i32) -> (i32, i32) {
    %c0_i32 = arith.constant 0 : i32
    %c0_i32_0 = arith.constant 0 : i32
    return %arg0, %c0_i32 : i32, i32
  }
  func.func @transform_1(%arg0: i32) -> (i32, i32) {
    %c0_i32 = arith.constant 0 : i32
    %c0_i32_0 = arith.constant 0 : i32
    %c0_i32_1 = arith.constant 0 : i32
    return %c0_i32, %c0_i32_0 : i32, i32
  }
  func.func @transform_2(%arg0: i32) -> (i32, i32) {
    %c0_i32 = arith.constant 0 : i32
    %c0_i32_0 = arith.constant 0 : i32
    %c0_i32_1 = arith.constant 0 : i32
    return %c0_i32, %c0_i32_0 : i32, i32
  }
  func.func @transform_3(%arg0: i32) -> (i32, i32) {
    %c0_i32 = arith.constant 0 : i32
    %c0_i32_0 = arith.constant 0 : i32
    return %arg0, %c0_i32 : i32, i32
  }
}

module attributes {stable_mosaic.version = 11 : i64} {
  func.func @_classifier_kernel(%arg0: i32, %arg1: memref<8x32xf32, #tpu.memory_space<vmem>>, %arg2: memref<32x128xf32, #tpu.memory_space<vmem>>, %arg3: memref<1x128xf32, #tpu.memory_space<vmem>>, %arg4: memref<8x128xf32, #tpu.memory_space<vmem>>) attributes {dimension_semantics = [#tpu.dimension_semantics<parallel>], iteration_bounds = array<i64: 1>, scalar_prefetch = 0 : i64, scratch_operands = 0 : i64, tpu.core_type = #tpu.core_type<tc>, window_params = [{transform_indices = @transform_0, window_bounds = array<i64: 8, 32>}, {pipeline_mode = #tpu.pipeline_mode<synchronous>, transform_indices = @transform_1, window_bounds = array<i64: 32, 128>}, {pipeline_mode = #tpu.pipeline_mode<synchronous>, transform_indices = @transform_2, window_bounds = array<i64: 1, 128>}, {transform_indices = @transform_3, window_bounds = array<i64: 8, 128>}]} {
    %c0 = arith.constant 0 : index
    %c0_0 = arith.constant 0 : index
    %0 = vector.load %arg1[%c0, %c0_0] : memref<8x32xf32, #tpu.memory_space<vmem>>, vector<8x32xf32>
    %c0_1 = arith.constant 0 : index
    %c0_2 = arith.constant 0 : index
    %1 = vector.load %arg2[%c0_1, %c0_2] : memref<32x128xf32, #tpu.memory_space<vmem>>, vector<32x128xf32>
    %cst = arith.constant dense<0.000000e+00> : vector<8x128xf32>
    %2 = tpu.matmul %0, %1, %cst {dimension_numbers = #tpu.dot_dimension_numbers<[1], [0], [0], [1], [0, 0, 1, 1], [], []>} : vector<8x32xf32>, vector<32x128xf32>, vector<8x128xf32> -> vector<8x128xf32>
    %c0_3 = arith.constant 0 : index
    %c0_4 = arith.constant 0 : index
    %3 = vector.load %arg3[%c0_3, %c0_4] : memref<1x128xf32, #tpu.memory_space<vmem>>, vector<1x128xf32>
    %4 = vector.broadcast %3 : vector<1x128xf32> to vector<8x128xf32>
    %5 = arith.addf %2, %4 : vector<8x128xf32>
    %cst_5 = arith.constant dense<0xFF800000> : vector<8xf32>
    %6 = vector.multi_reduction <maximumf>, %5, %cst_5 [1] : vector<8x128xf32> to vector<8xf32>
    %7 = vector.shape_cast %6 : vector<8xf32> to vector<8x1xf32>
    %8 = vector.broadcast %7 : vector<8x1xf32> to vector<8x128xf32>
    %9 = arith.subf %5, %8 : vector<8x128xf32>
    %10 = math.exp %9 : vector<8x128xf32>
    %cst_6 = arith.constant dense<0.000000e+00> : vector<8xf32>
    %11 = vector.multi_reduction <add>, %10, %cst_6 [1] : vector<8x128xf32> to vector<8xf32>
    %12 = vector.shape_cast %11 : vector<8xf32> to vector<8x1xf32>
    %13 = vector.broadcast %12 : vector<8x1xf32> to vector<8x128xf32>
    %14 = arith.divf %10, %13 : vector<8x128xf32>
    %c0_7 = arith.constant 0 : index
    %c0_8 = arith.constant 0 : index
    %15 = vector.load %arg4[%c0_7, %c0_8] : memref<8x128xf32, #tpu.memory_space<vmem>>, vector<8x128xf32>
    tpu.vector_store %arg4[%c0_7, %c0_8], %14 {strides = array<i32>} : memref<8x128xf32, #tpu.memory_space<vmem>>, vector<8x128xf32>,
    return
  }
  func.func @transform_0(%arg0: i32) -> (i32, i32) {
    %c0_i32 = arith.constant 0 : i32
    %c0_i32_0 = arith.constant 0 : i32
    return %arg0, %c0_i32 : i32, i32
  }
  func.func @transform_1(%arg0: i32) -> (i32, i32) {
    %c0_i32 = arith.constant 0 : i32
    %c0_i32_0 = arith.constant 0 : i32
    %c0_i32_1 = arith.constant 0 : i32
    return %c0_i32, %c0_i32_0 : i32, i32
  }
  func.func @transform_2(%arg0: i32) -> (i32, i32) {
    %c0_i32 = arith.constant 0 : i32
    %c0_i32_0 = arith.constant 0 : i32
    %c0_i32_1 = arith.constant 0 : i32
    return %c0_i32, %c0_i32_0 : i32, i32
  }
  func.func @transform_3(%arg0: i32) -> (i32, i32) {
    %c0_i32 = arith.constant 0 : i32
    %c0_i32_0 = arith.constant 0 : i32
    return %arg0, %c0_i32 : i32, i32
  }
}

</mosaic_0001>

<bundles_post_ra>
// kernel: tpu_custom_call.1
= control target key start
LH: loop header
LB: loop body
LE: loop exit
PB: predicated region body
PF: predicated region fallthrough
CT: control target
= control target key end

     0   :  { %8 = vsyncpa [#allocation3], 0  ;;  %s245_s0 = inlined_call_operand.hbm [shape: f32[8,32], index: 0, kind: input, shape index: {}]   ;;  %s246_s1 = inlined_call_operand.hbm [shape: f32[32,128], index: 1, kind: input, shape index: {}]   ;;  %s247_s2 = inlined_call_operand.vmem [shape: f32[1,128], index: 2, kind: input, shape index: {}]   ;;  %s248_s3 = inlined_call_operand.hbm [shape: f32[8,128], index: 3, kind: output, shape index: {}]  }
   0x1   :  { %9 = vsyncpa [#allocation6], 0 }
   0x2   :  { %10 = vsyncpa [#allocation4], 0  ;;  %s16_s14 = sshll.u32 %s245_s0, 4  ;;  %s208_s15 = smov [#allocation2]   ;;  %s17_s14 = int_to_ptr.hbm [resolvable:$true] %s16_s14 }
   0x3   :  { %s18_s16 = sshll.u32 %s208_s15, 4  ;;  %s26_s19 = sshll.u32 %s246_s1, 4  ;;  %s19_s16 = int_to_ptr.vmem [resolvable:$true] %s18_s16  ;;  %s27_s19 = int_to_ptr.hbm [resolvable:$true] %s26_s19 }
   0x4   :  { %21 = dma.hbm_to_vmem [thread:$0]  %s17_s14, 128, %s19_s16, [#allocation3]  }
   0x5   :  { %s209_s20 = smov [#allocation5]   ;;  %s210_s22 = smov 128  }
   0x6   :  { %s28_s21 = sshll.u32 %s209_s20, 4  ;;  %s211_s23 = smov 8   ;;  %s29_s21 = int_to_ptr.vmem [resolvable:$true] %s28_s21 }
   0x7   :  { %34 = dma.hbm_to_vmem [thread:$0]  %s27_s19, 512, %s29_s21, [#allocation6], %s210_s22, %s210_s22, %s211_s23  }
   0x8   :  { %202 = dma.done.wait [#allocation3], 128  }
   0x9   :  { %203 = vsyncadd [#allocation3], 4294967168 }
   0xa   :  { %204 = dma.done.wait [#allocation6], 512  }
   0xb   :  { %205 = vsyncadd [#allocation6], 4294966784  ;;  %v49_v0 = vld [vmem:[#allocation5 + $0x18] sm:$0xff]  ;;  %v48_v1 = vld [vmem:[#allocation5 + $0x10] sm:$0xff]  ;;  %vm54_vm0 = vcmask 261120   ;;  %s108_s27 = sshll.u32 %s248_s3, 4  ;;  %s109_s27 = int_to_ptr.hbm [resolvable:$true] %s108_s27 }
   0xc   :  { %70 = vmatpush.msra.mxu0 %v49_v0  ;;  %v47_v2 = vld [vmem:[#allocation5 + $0x8] sm:$0xff]  ;;  %v46_v3 = vld [vmem:[#allocation5] sm:$0xff]  ;;  %v45_v4 = vld [vmem:[#allocation2] sm:$0xff] }
   0xd   :  { %v125_v5 = vld [vmem:[%s247_s2] ss:$0 sm:$0xff]  ;;  %s212_s2 = smov [#allocation7]  }
   0xe   :  { %71 = vmatpush.msra.mxu0 %v48_v1  ;;  %s106_s24 = sshll.u32 %s212_s2, 4  ;;  %s107_s24 = int_to_ptr.vmem [resolvable:$true] %s106_s24 }
  0x10   :  { %72 = vmatpush.msra.mxu0 %v47_v2 }
  0x12   :  { %73 = vmatpush.msra.mxu0 %v46_v3 }
  0x13   :  { %119 = vmatmul.msk.f32.vlgmr.msra.gmra.mxu0 %vm54_vm0, %v45_v4 }
  0x90   :  { %v75_v6 = vpop.f32.mrf.mxu0 }
  0x91   :  { %v76_v7 = vadd.f32 %v125_v5, %v75_v6 }
  0x93   :  { %78 = vmax.xlane.f32.xlu0 %v76_v7 }
 0x106   :  { %v79_v8 = vpop.xlane.xlu0 %78 }
 0x107   :  { %v80_v9 = vsub.f32 %v76_v7, %v79_v8 }
 0x109   :  { %v81_v10 = vmul.f32 1.442695, %v80_v9 }
 0x10b   :  { %126 = vpow2.f32 %v81_v10 }
 0x111   :  { %v127_v11 = vpop.eup %126 }
 0x112   :  { %83 = vadd.xlane.f32.xlu0 %v127_v11 }
 0x185   :  { %v84_v12 = vpop.xlane.xlu0 %83 }
 0x186   :  { %128 = vrcp.f32 %v84_v12  ;;  %v96_v16 = vand.u32 2147483648, %v84_v12  ;;  %v94_v18 = vand.u32 2147483647, %v84_v12  ;;  %vm90_vm2 = vweird.f32 %v84_v12 }
 0x188   :  { %v97_v20 = vor.u32 1.1754944e-38, %v96_v16  ;;  %vm95_vm4 = vcmp.eq.f32.partialorder %v94_v18, 8.507059e+37 }
 0x18c   :  { %v129_v13 = vpop.eup %128 }
 0x18d   :  { %v86_v14 = vmul.f32 %v129_v13, %v84_v12  ;;  %vm91_vm1 = vweird.f32 %v129_v13 }
 0x18e   :  { %vm92_vm3 = vmor %vm90_vm2, %vm91_vm1 }
 0x18f   :  { %v87_v15 = vsub.f32 1.0, %v86_v14 }
 0x191   :  { %v88_v17 = vmul.f32 %v129_v13, %v87_v15 }
 0x193   :  { %v89_v19 = vadd.f32 %v129_v13, %v88_v17 }
 0x195   :  { %v93_v21 = vsel %vm92_vm3, %v129_v13, %v89_v19 }
 0x196   :  { %v98_v22 = vsel %vm95_vm4, %v97_v20, %v93_v21 }
 0x197   :  { %v99_v23 = vmul.f32 %v127_v11, %v98_v22 }
 0x199   :  { %100 = vst [vmem:[#allocation7] sm:$0xff] %v99_v23 }
 0x19a   :  { %111 = dma.vmem_to_hbm [thread:$0]  %s107_s24, 128, %s109_s27, [#allocation4]  }
 0x19b   :  { %206 = dma.done.wait [#allocation4], 128  }
 0x19c   :  { %207 = vsyncadd [#allocation4], 4294967168 }
 0x19d   :  { %116 = vsyncpa [#allocation3], 1 }
 0x19e   :  { %117 = vsyncpa [#allocation6], 1 }
 0x19f   :  { %118 = vsyncpa [#allocation4], 1 }

// kernel: tpu_custom_call.1
= control target key start
LH: loop header
LB: loop body
LE: loop exit
PB: predicated region body
PF: predicated region fallthrough
CT: control target
= control target key end

     0   :  { %8 = vsyncpa [#allocation3], 0  ;;  %s245_s0 = inlined_call_operand.hbm [shape: f32[8,32], index: 0, kind: input, shape index: {}]   ;;  %s246_s1 = inlined_call_operand.hbm [shape: f32[32,128], index: 1, kind: input, shape index: {}]   ;;  %s247_s2 = inlined_call_operand.vmem [shape: f32[1,128], index: 2, kind: input, shape index: {}]   ;;  %s248_s3 = inlined_call_operand.hbm [shape: f32[8,128], index: 3, kind: output, shape index: {}]  }
   0x1   :  { %9 = vsyncpa [#allocation6], 0 }
   0x2   :  { %10 = vsyncpa [#allocation4], 0  ;;  %s16_s14 = sshll.u32 %s245_s0, 4  ;;  %s208_s15 = smov [#allocation2]   ;;  %s17_s14 = int_to_ptr.hbm [resolvable:$true] %s16_s14 }
   0x3   :  { %s18_s16 = sshll.u32 %s208_s15, 4  ;;  %s26_s19 = sshll.u32 %s246_s1, 4  ;;  %s19_s16 = int_to_ptr.vmem [resolvable:$true] %s18_s16  ;;  %s27_s19 = int_to_ptr.hbm [resolvable:$true] %s26_s19 }
   0x4   :  { %21 = dma.hbm_to_vmem [thread:$0]  %s17_s14, 128, %s19_s16, [#allocation3]  }
   0x5   :  { %s209_s20 = smov [#allocation5]   ;;  %s210_s22 = smov 128  }
   0x6   :  { %s28_s21 = sshll.u32 %s209_s20, 4  ;;  %s211_s23 = smov 8   ;;  %s29_s21 = int_to_ptr.vmem [resolvable:$true] %s28_s21 }
   0x7   :  { %34 = dma.hbm_to_vmem [thread:$0]  %s27_s19, 512, %s29_s21, [#allocation6], %s210_s22, %s210_s22, %s211_s23  }
   0x8   :  { %202 = dma.done.wait [#allocation3], 128  }
   0x9   :  { %203 = vsyncadd [#allocation3], 4294967168 }
   0xa   :  { %204 = dma.done.wait [#allocation6], 512  }
   0xb   :  { %205 = vsyncadd [#allocation6], 4294966784  ;;  %v49_v0 = vld [vmem:[#allocation5 + $0x18] sm:$0xff]  ;;  %v48_v1 = vld [vmem:[#allocation5 + $0x10] sm:$0xff]  ;;  %vm54_vm0 = vcmask 261120   ;;  %s108_s27 = sshll.u32 %s248_s3, 4  ;;  %s109_s27 = int_to_ptr.hbm [resolvable:$true] %s108_s27 }
   0xc   :  { %70 = vmatpush.msra.mxu0 %v49_v0  ;;  %v47_v2 = vld [vmem:[#allocation5 + $0x8] sm:$0xff]  ;;  %v46_v3 = vld [vmem:[#allocation5] sm:$0xff]  ;;  %v45_v4 = vld [vmem:[#allocation2] sm:$0xff] }
   0xd   :  { %v125_v5 = vld [vmem:[%s247_s2] ss:$0 sm:$0xff]  ;;  %s212_s2 = smov [#allocation7]  }
   0xe   :  { %71 = vmatpush.msra.mxu0 %v48_v1  ;;  %s106_s24 = sshll.u32 %s212_s2, 4  ;;  %s107_s24 = int_to_ptr.vmem [resolvable:$true] %s106_s24 }
  0x10   :  { %72 = vmatpush.msra.mxu0 %v47_v2 }
  0x12   :  { %73 = vmatpush.msra.mxu0 %v46_v3 }
  0x13   :  { %119 = vmatmul.msk.f32.vlgmr.msra.gmra.mxu0 %vm54_vm0, %v45_v4 }
  0x90   :  { %v75_v6 = vpop.f32.mrf.mxu0 }
  0x91   :  { %v76_v7 = vadd.f32 %v125_v5, %v75_v6 }
  0x93   :  { %78 = vmax.xlane.f32.xlu0 %v76_v7 }
 0x106   :  { %v79_v8 = vpop.xlane.xlu0 %78 }
 0x107   :  { %v80_v9 = vsub.f32 %v76_v7, %v79_v8 }
 0x109   :  { %v81_v10 = vmul.f32 1.442695, %v80_v9 }
 0x10b   :  { %126 = vpow2.f32 %v81_v10 }
 0x111   :  { %v127_v11 = vpop.eup %126 }
 0x112   :  { %83 = vadd.xlane.f32.xlu0 %v127_v11 }
 0x185   :  { %v84_v12 = vpop.xlane.xlu0 %83 }
 0x186   :  { %128 = vrcp.f32 %v84_v12  ;;  %v96_v16 = vand.u32 2147483648, %v84_v12  ;;  %v94_v18 = vand.u32 2147483647, %v84_v12  ;;  %vm90_vm2 = vweird.f32 %v84_v12 }
 0x188   :  { %v97_v20 = vor.u32 1.1754944e-38, %v96_v16  ;;  %vm95_vm4 = vcmp.eq.f32.partialorder %v94_v18, 8.507059e+37 }
 0x18c   :  { %v129_v13 = vpop.eup %128 }
 0x18d   :  { %v86_v14 = vmul.f32 %v129_v13, %v84_v12  ;;  %vm91_vm1 = vweird.f32 %v129_v13 }
 0x18e   :  { %vm92_vm3 = vmor %vm90_vm2, %vm91_vm1 }
 0x18f   :  { %v87_v15 = vsub.f32 1.0, %v86_v14 }
 0x191   :  { %v88_v17 = vmul.f32 %v129_v13, %v87_v15 }
 0x193   :  { %v89_v19 = vadd.f32 %v129_v13, %v88_v17 }
 0x195   :  { %v93_v21 = vsel %vm92_vm3, %v129_v13, %v89_v19 }
 0x196   :  { %v98_v22 = vsel %vm95_vm4, %v97_v20, %v93_v21 }
 0x197   :  { %v99_v23 = vmul.f32 %v127_v11, %v98_v22 }
 0x199   :  { %100 = vst [vmem:[#allocation7] sm:$0xff] %v99_v23 }
 0x19a   :  { %111 = dma.vmem_to_hbm [thread:$0]  %s107_s24, 128, %s109_s27, [#allocation4]  }
 0x19b   :  { %206 = dma.done.wait [#allocation4], 128  }
 0x19c   :  { %207 = vsyncadd [#allocation4], 4294967168 }
 0x19d   :  { %116 = vsyncpa [#allocation3], 1 }
 0x19e   :  { %117 = vsyncpa [#allocation6], 1 }
 0x19f   :  { %118 = vsyncpa [#allocation4], 1 }

</bundles_post_ra>
